<compile_context>
chip_gen: v7x
topology: tpu7x:2x2x1
jax: 0.10.0
libtpu: 0.0.40
codegen_flags: <defaults>
</compile_context>

<pallas_src>
import jax
import jax.numpy as jnp
from jax.experimental import pallas as pl
from jax.experimental.pallas import tpu as pltpu


def make_mlp_kernel(chunk, n_chunks):
    """Kernel factory: chunk = lanes per inner iteration, n_chunks = tile_b // chunk."""

    def mlp_kernel(x_ref, w_ref, o_ref):
        # x_ref: (8, TB)  rows 0:7 = features, row 7 = ones (bias lane for layer 1)
        # w_ref: (40, 128) packed params        o_ref: (1, TB)

        # Hoist all weight slices above the lane-chunk loop (loaded once per tile).
        w1 = w_ref[0:16, 0:8]          # [W1^T | b1]  (16, 8)
        w2 = w_ref[16:24, 0:16]        # W2^T         (8, 16)
        b2 = w_ref[16:24, 16:17]       # (8, 1)
        w3 = w_ref[24:28, 0:8]         # W3^T         (4, 8)
        b3 = w_ref[24:28, 8:9]         # (4, 1)
        w4 = w_ref[32:33, 0:4]         # W4^T         (1, 4)
        b4 = w_ref[32:33, 4:5]         # (1, 1)

        @pl.loop(0, n_chunks)
        def _(c):
            i = pl.multiple_of(c * chunk, 128)
            xc = x_ref[:, pl.ds(i, chunk)]                               # (8, chunk)

            # layer 1: bias folded into the matmul via the ones row of xc
            h1 = jnp.maximum(
                jnp.dot(w1, xc, preferred_element_type=jnp.float32), 0.0)   # (16, chunk)
            # layer 2
            h2 = jnp.maximum(
                jnp.dot(w2, h1, preferred_element_type=jnp.float32) + b2, 0.0)  # (8, chunk)
            # layer 3
            h3 = jnp.maximum(
                jnp.dot(w3, h2, preferred_element_type=jnp.float32) + b3, 0.0)  # (4, chunk)
            # layer 4 + sigmoid (exp runs on the EUP slot)
            z = jnp.dot(w4, h3, preferred_element_type=jnp.float32) + b4        # (1, chunk)
            o_ref[:, pl.ds(i, chunk)] = jax.nn.sigmoid(z)

    return mlp_kernel


def pack_params(params):
    """Pack w1..w4 (stored (in,out)) and b1..b4 ((1,out)) into one (40,128) f32 slab.

    Row ranges are 8-aligned:
      rows  0:16  -> W1^T (16,7) cols 0:7,  b1 (16,1) col 7   (=> [W1^T|b1] is cols 0:8)
      rows 16:24  -> W2^T (8,16) cols 0:16, b2 (8,1)  col 16
      rows 24:28  -> W3^T (4,8)  cols 0:8,  b3 (4,1)  col 8
      rows 32:33  -> W4^T (1,4)  cols 0:4,  b4 (1,1)  col 4
    """
    slab = jnp.zeros((40, 128), jnp.float32)
    slab = slab.at[0:16, 0:7].set(params["w1"].T)
    slab = slab.at[0:16, 7:8].set(params["b1"].T)
    slab = slab.at[16:24, 0:16].set(params["w2"].T)
    slab = slab.at[16:24, 16:17].set(params["b2"].T)
    slab = slab.at[24:28, 0:8].set(params["w3"].T)
    slab = slab.at[24:28, 8:9].set(params["b3"].T)
    slab = slab.at[32:33, 0:4].set(params["w4"].T)
    slab = slab.at[32:33, 4:5].set(params["b4"].T)
    return slab


def net_forward(x, params, *, tile_b=65536, chunk=1024):
    """x: (B, 7) float32. Returns (B, 1) float32 = sigmoid(MLP(x)).

    tile_b: lanes per grid step (DMA granularity). Default 64K lanes -> ~2 MiB of
            input per step, which amortizes the per-step pipeline overhead while the
            double-buffered footprint (~4.7 MiB) stays inside every generation's
            default scoped VMEM (16 MiB on v5e).
    chunk:  lanes per inner compute iteration (keeps intermediates to a few vregs).
    """
    B, F = x.shape
    assert F == 7

    # ---- tile-size selection (lane axis only) ----
    b_rounded = pl.cdiv(B, 128) * 128
    tb = max(128, min((tile_b // 128) * 128, b_rounded))
    # Keep >= 2 grid steps when the batch allows it, so v7x's second TensorCore
    # gets work under dimension_semantics=("parallel",).
    if b_rounded // tb < 2 and b_rounded >= 256:
        tb = pl.cdiv(b_rounded // 2, 128) * 128
    B_pad = pl.cdiv(B, tb) * tb

    # Inner lane-chunk size: a multiple of 128 that divides tb.
    ck = max(128, min((chunk // 128) * 128, tb))
    while tb % ck != 0:
        ck -= 128
    n_chunks = tb // ck

    # ---- inputs: feature-major, ones row appended for the layer-1 bias ----
    # Single fused pad-of-transpose; padded tail columns are computed then sliced away.
    x8 = jnp.ones((8, B_pad), jnp.float32).at[:7, :B].set(x.T)
    slab = pack_params(params)

    grid = (B_pad // tb,)

    # ---- compiler params: only raise the VMEM limit if the footprint needs it ----
    # per step: x tile double-buffered + out tile double-buffered + slab + intermediates
    vmem_est = 2 * (8 * tb * 4) + 2 * (tb * 4) + 2 * (40 * 128 * 4) + 48 * ck * 4 + (1 << 20)
    cparams = {"dimension_semantics": ("parallel",)}
    if vmem_est > (16 << 20):
        cparams["vmem_limit_bytes"] = int(min(vmem_est, 64 << 20))

    cost = pl.CostEstimate(
        flops=584 * B_pad,              # 2*(8*16 + 16*8 + 8*4 + 4*1) per element
        transcendentals=B_pad,          # sigmoid exp
        bytes_accessed=36 * B_pad + 40 * 128 * 4,   # 8*4 in + 1*4 out per lane + slab
    )

    out = pl.pallas_call(
        make_mlp_kernel(ck, n_chunks),
        out_shape=jax.ShapeDtypeStruct((1, B_pad), jnp.float32),
        grid_spec=pltpu.PrefetchScalarGridSpec(
            num_scalar_prefetch=0,
            grid=grid,
            in_specs=[
                pl.BlockSpec((8, tb), lambda i: (0, i)),     # x tile (lane-dense)
                pl.BlockSpec((40, 128), lambda i: (0, 0)),   # packed params, fetched once
            ],
            out_specs=pl.BlockSpec((1, tb), lambda i: (0, i)),  # lane-dense output
        ),
        compiler_params=pltpu.CompilerParams(**cparams),
        cost_estimate=cost,
    )(x8, slab)

    return out[0, :B].reshape(B, 1)


def init_params(key):
    """Deterministic init mimicking torch.nn.Linear default (U[-1/sqrt(fan_in), +])."""
    dims = [(7, 16), (16, 8), (8, 4), (4, 1)]
    params = {}
    for idx, (fan_in, fan_out) in enumerate(dims, start=1):
        key, kw, kb = jax.random.split(key, 3)
        bound = 1.0 / jnp.sqrt(float(fan_in))
        # stored as (in, out) so the reference does x @ W + b
        params[f"w{idx}"] = jax.random.uniform(
            kw, (fan_in, fan_out), jnp.float32, -bound, bound)
        params[f"b{idx}"] = jax.random.uniform(
            kb, (1, fan_out), jnp.float32, -bound, bound)
    return params


def reference_forward(x, params):
    h = x
    for idx in range(1, 4):
        h = jnp.maximum(h @ params[f"w{idx}"] + params[f"b{idx}"], 0.0)
    z = h @ params["w4"] + params["b4"]
    return jax.nn.sigmoid(z)


if __name__ == "__main__":
    root = jax.random.PRNGKey(0)
    pkey, xkey = jax.random.split(root)
    params = init_params(pkey)

    # Primary small-shape check plus two shapes that exercise padding, the >=2-step
    # grid split, and the multi-chunk inner loop.
    for i, batch in enumerate((16, 300, 4096)):
        x = jax.random.normal(jax.random.fold_in(xkey, i), (batch, 7), jnp.float32)
        out = jax.block_until_ready(net_forward(x, params))
        ref = reference_forward(x, params)
        assert out.shape == (batch, 1)
        assert jnp.allclose(out, ref, atol=1e-5, rtol=1e-5), (
            batch, float(jnp.max(jnp.abs(out - ref))))

    print("KERNEL_OK")
</pallas_src>

<mosaic_0001>
module attributes {stable_mosaic.version = 11 : i64} {
  func.func @mlp_kernel(%arg0: i32, %arg1: memref<8x128xf32, #tpu.memory_space<vmem>>, %arg2: memref<40x128xf32, #tpu.memory_space<vmem>>, %arg3: memref<1x128xf32, #tpu.memory_space<vmem>>) attributes {dimension_semantics = [#tpu.dimension_semantics<parallel>], iteration_bounds = array<i64: 1>, scalar_prefetch = 0 : i64, scratch_operands = 0 : i64, tpu.core_type = #tpu.core_type<tc>, window_params = [{transform_indices = @transform_0, window_bounds = array<i64: 8, 128>}, {pipeline_mode = #tpu.pipeline_mode<synchronous>, transform_indices = @transform_1, window_bounds = array<i64: 40, 128>}, {transform_indices = @transform_2, window_bounds = array<i64: 1, 128>}]} {
    %c0 = arith.constant 0 : index
    %c0_0 = arith.constant 0 : index
    %0 = vector.load %arg2[%c0, %c0_0] : memref<40x128xf32, #tpu.memory_space<vmem>>, vector<16x8xf32>
    %c16 = arith.constant 16 : index
    %c0_1 = arith.constant 0 : index
    %1 = vector.load %arg2[%c16, %c0_1] : memref<40x128xf32, #tpu.memory_space<vmem>>, vector<8x16xf32>
    %c16_2 = arith.constant 16 : index
    %c16_3 = arith.constant 16 : index
    %2 = vector.load %arg2[%c16_2, %c16_3] : memref<40x128xf32, #tpu.memory_space<vmem>>, vector<8x1xf32>
    %c24 = arith.constant 24 : index
    %c0_4 = arith.constant 0 : index
    %3 = vector.load %arg2[%c24, %c0_4] : memref<40x128xf32, #tpu.memory_space<vmem>>, vector<4x8xf32>
    %c24_5 = arith.constant 24 : index
    %c8 = arith.constant 8 : index
    %4 = vector.load %arg2[%c24_5, %c8] : memref<40x128xf32, #tpu.memory_space<vmem>>, vector<4x1xf32>
    %c32 = arith.constant 32 : index
    %c0_6 = arith.constant 0 : index
    %5 = vector.load %arg2[%c32, %c0_6] : memref<40x128xf32, #tpu.memory_space<vmem>>, vector<1x4xf32>
    %c32_7 = arith.constant 32 : index
    %c4 = arith.constant 4 : index
    %6 = vector.load %arg2[%c32_7, %c4] : memref<40x128xf32, #tpu.memory_space<vmem>>, vector<1x1xf32>
    %c0_i32 = arith.constant 0 : i32
    %c1_i32 = arith.constant 1 : i32
    %7 = arith.muli %c0_i32, %c1_i32 : i32
    %c0_i32_8 = arith.constant 0 : i32
    %8 = arith.addi %c0_i32_8, %7 : i32
    %c128_i32 = arith.constant 128 : i32
    %9 = arith.muli %8, %c128_i32 : i32
    %10 = tpu.assume_multiple %9, 128 : i32
    %c0_9 = arith.constant 0 : index
    %11 = arith.index_cast %10 : i32 to index
    %12 = vector.load %arg1[%c0_9, %11] : memref<8x128xf32, #tpu.memory_space<vmem>>, vector<8x128xf32>
    %cst = arith.constant dense<0.000000e+00> : vector<16x128xf32>
    %13 = tpu.matmul %0, %12, %cst {dimension_numbers = #tpu.dot_dimension_numbers<[1], [0], [0], [1], [0, 0, 1, 1], [], []>} : vector<16x8xf32>, vector<8x128xf32>, vector<16x128xf32> -> vector<16x128xf32>
    %cst_10 = arith.constant 0.000000e+00 : f32
    %14 = vector.broadcast %cst_10 : f32 to vector<16x128xf32>
    %15 = arith.maximumf %13, %14 : vector<16x128xf32>
    %cst_11 = arith.constant dense<0.000000e+00> : vector<8x128xf32>
    %16 = tpu.matmul %1, %15, %cst_11 {dimension_numbers = #tpu.dot_dimension_numbers<[1], [0], [0], [1], [0, 0, 1, 1], [], []>} : vector<8x16xf32>, vector<16x128xf32>, vector<8x128xf32> -> vector<8x128xf32>
    %17 = vector.broadcast %2 : vector<8x1xf32> to vector<8x128xf32>
    %18 = arith.addf %16, %17 : vector<8x128xf32>
    %cst_12 = arith.constant 0.000000e+00 : f32
    %19 = vector.broadcast %cst_12 : f32 to vector<8x128xf32>
    %20 = arith.maximumf %18, %19 : vector<8x128xf32>
    %cst_13 = arith.constant dense<0.000000e+00> : vector<4x128xf32>
    %21 = tpu.matmul %3, %20, %cst_13 {dimension_numbers = #tpu.dot_dimension_numbers<[1], [0], [0], [1], [0, 0, 1, 1], [], []>} : vector<4x8xf32>, vector<8x128xf32>, vector<4x128xf32> -> vector<4x128xf32>
    %22 = vector.broadcast %4 : vector<4x1xf32> to vector<4x128xf32>
    %23 = arith.addf %21, %22 : vector<4x128xf32>
    %cst_14 = arith.constant 0.000000e+00 : f32
    %24 = vector.broadcast %cst_14 : f32 to vector<4x128xf32>
    %25 = arith.maximumf %23, %24 : vector<4x128xf32>
    %cst_15 = arith.constant dense<0.000000e+00> : vector<1x128xf32>
    %26 = tpu.matmul %5, %25, %cst_15 {dimension_numbers = #tpu.dot_dimension_numbers<[1], [0], [0], [1], [0, 0, 1, 1], [], []>} : vector<1x4xf32>, vector<4x128xf32>, vector<1x128xf32> -> vector<1x128xf32>
    %27 = vector.broadcast %6 : vector<1x1xf32> to vector<1x128xf32>
    %28 = arith.addf %26, %27 : vector<1x128xf32>
    %29 = arith.negf %28 : vector<1x128xf32>
    %30 = math.exp %29 : vector<1x128xf32>
    %cst_16 = arith.constant 1.000000e+00 : f32
    %31 = vector.broadcast %cst_16 : f32 to vector<1x128xf32>
    %32 = arith.addf %31, %30 : vector<1x128xf32>
    %33 = arith.divf %31, %32 : vector<1x128xf32>
    %c0_17 = arith.constant 0 : index
    %34 = arith.index_cast %10 : i32 to index
    %35 = vector.load %arg3[%c0_17, %34] : memref<1x128xf32, #tpu.memory_space<vmem>>, vector<1x128xf32>
    tpu.vector_store %arg3[%c0_17, %34], %33 {strides = array<i32>} : memref<1x128xf32, #tpu.memory_space<vmem>>, vector<1x128xf32>,
    %c1_i32_18 = arith.constant 1 : i32
    return
  }
  func.func @transform_0(%arg0: i32) -> (i32, i32) {
    %c0_i32 = arith.constant 0 : i32
    %c0_i32_0 = arith.constant 0 : i32
    return %c0_i32, %arg0 : i32, i32
  }
  func.func @transform_1(%arg0: i32) -> (i32, i32) {
    %c0_i32 = arith.constant 0 : i32
    %c0_i32_0 = arith.constant 0 : i32
    %c0_i32_1 = arith.constant 0 : i32
    return %c0_i32, %c0_i32_0 : i32, i32
  }
  func.func @transform_2(%arg0: i32) -> (i32, i32) {
    %c0_i32 = arith.constant 0 : i32
    %c0_i32_0 = arith.constant 0 : i32
    return %c0_i32, %arg0 : i32, i32
  }
}

</mosaic_0001>

<bundles_post_ra>
// kernel: tpu_custom_call.1
= control target key start
LH: loop header
LB: loop body
LE: loop exit
PB: predicated region body
PF: predicated region fallthrough
CT: control target
= control target key end

     0   :  { %7 = vsyncpa [#allocation3], 0  ;;  %s598_s0 = inlined_call_operand.hbm [shape: f32[8,128], index: 0, kind: input, shape index: {}]   ;;  %s599_s1 = inlined_call_operand.hbm [shape: f32[40,128], index: 1, kind: input, shape index: {}]   ;;  %s600_s2 = inlined_call_operand.hbm [shape: f32[1,128], index: 2, kind: output, shape index: {}]  }
   0x1   :  { %8 = vsyncpa [#allocation6], 0 }
   0x2   :  { %9 = vsyncpa [#allocation4], 0  ;;  %s523_s9 = smov [#allocation2]   ;;  %s524_s11 = smov [#allocation5]  }
   0x3   :  { %s16_s10 = sshll.u32 %s523_s9, 4  ;;  %s25_s12 = sshll.u32 %s524_s11, 4  ;;  %s17_s10 = int_to_ptr.vmem [resolvable:$true] %s16_s10  ;;  %s549_s12 = int_to_ptr.vmem [resolvable:$true] %s25_s12 }
   0x4   :  { %s451_s15 = scalar_lea.hbm %s598_s0, 128 }
   0x5   :  { %p452_p0 = scmp.ne.s32.totalorder %s598_s0, %s451_s15  ;;  %p455_p1 = scmp.lt.u32.totalorder %s451_s15, %s598_s0 }
   0x7   :  { %p457_p2 = pnand %p455_p1, %p452_p0 }
   0x9   :  { %460 = shalt.err (!%p457_p2)
}
   0xa   :  { %s461_s20 = scalar_lea.vmem %s17_s10, 128  ;;  %p466_p4 = scmp.lt.s32.totalorder %s17_s10, %s17_s10 }
   0xb   :  { %p462_p3 = scmp.ne.s32.totalorder %s17_s10, %s461_s20  ;;  %p467_p5 = scmp.lt.s32.totalorder %s461_s20, %s461_s20 }
   0xd   :  { %p468_p6 = por %p467_p5, %p466_p4 }
   0xf   :  { %p469_p7 = pnand %p468_p6, %p462_p3 }
  0x11   :  { %472 = shalt.err (!%p469_p7)
}
  0x12   :  { %19 = dma.hbm_to_vmem [thread:$0]  %s598_s0, 128, %s17_s10, [#allocation3]  }
  0x13   :  { %s473_s25 = scalar_lea.hbm %s599_s1, 640 }
  0x14   :  { %p474_p8 = scmp.ne.s32.totalorder %s599_s1, %s473_s25  ;;  %p477_p9 = scmp.lt.u32.totalorder %s473_s25, %s599_s1 }
  0x16   :  { %p479_p10 = pnand %p477_p9, %p474_p8 }
  0x18   :  { %482 = shalt.err (!%p479_p10)
}
  0x19   :  { %s483_s30 = scalar_lea.vmem %s549_s12, 640  ;;  %p488_p12 = scmp.lt.s32.totalorder %s549_s12, %s549_s12 }
  0x1a   :  { %p484_p11 = scmp.ne.s32.totalorder %s549_s12, %s483_s30  ;;  %p489_p13 = scmp.lt.s32.totalorder %s483_s30, %s483_s30 }
  0x1c   :  { %p490_p0 = por %p489_p13, %p488_p12 }
  0x1e   :  { %p491_p1 = pnand %p490_p0, %p484_p11 }
  0x20   :  { %494 = shalt.err (!%p491_p1)
}
  0x21   :  { %s525_s0 = smov 128   ;;  %s526_s3 = smov 8  }
  0x22   :  { %31 = dma.hbm_to_vmem [thread:$0]  %s599_s1, 640, %s549_s12, [#allocation6], %s525_s0, %s525_s0, %s526_s3  }
  0x23   :  { %517 = dma.done.wait [#allocation3], 128  }
  0x24   :  { %518 = vsyncadd [#allocation3], 4294967168 }
  0x25   :  { %519 = dma.done.wait [#allocation6], 640  }
  0x26   :  { %520 = vsyncadd [#allocation6], 4294966656  ;;  %vm44_vm0 = vcmask 64512   ;;  %v43_v0 = vld [vmem:[#allocation2] sm:$0xff]  ;;  %v38_v1 = vld [vmem:[#allocation5] sm:$0xff]  ;;  %v527_v3 = vmov 0.0|0.0  }
  0x27   :  { %v39_v2 = vld [vmem:[#allocation5 + $0x8] sm:$0xff]  ;;  %407 = vmatprep.subr.mxu0 %v43_v0  ;;  %409 = vmatprep.mubr.msk.f32.mxu0 %vm44_vm0, %v38_v1  ;;  %vm528_vm1 = vmmov 0   ;;  %v529_v4 = vmov 0.0   ;;  %v40_v5 = vld [vmem:[#allocation5 + $0x10] sm:$0xff]  ;;  %v530_v6 = vmov 16   ;;  %vm133_vm2 = vcmask 130048  }
  0x28   :  { %408 = vmatpush3.msra.mxu0 %v43_v0  ;;  %429 = vmatprep.subr.bf16.mxu1 %v527_v3  ;;  %v41_v12 = vld [vmem:[#allocation5 + $0x18] sm:$0xf]  ;;  %v531_v13 = vmov 8   ;;  %v42_v19 = vld [vmem:[#allocation5 + $0x20] sm:$0x1]  ;;  %v532_v20 = vmov 4  }
  0x29   :  { %410 = vmatmul.mubr.msk.f32.vlgmr.msra.gmra.mrb[0].mxu0 %vm44_vm0, %v39_v2  ;;  %416 = vmatprep.mubr.msk.f32.mxu1 %vm528_vm1, %v529_v4  ;;  %vm293_vm3 = vcmask 1043456   ;;  %vm290_vm4 = vcmask 31744   ;;  %s533_s1 = smov [#allocation7]  }
  0x2a   :  { %419 = vmatprep.subr.mxu0 %v529_v4  ;;  %421 = vmatprep.mubr.msk.f32.mxu0 %vm528_vm1, %v529_v4  ;;  %s380_s6 = sshll.u32 %s533_s1, 4  ;;  %s381_s6 = int_to_ptr.vmem [resolvable:$true] %s380_s6 }
  0x2b   :  { %443 = vset.pattern.permute.xlu0 %v530_v6  ;;  %445 = vset.pattern.permute.xlu1 %v532_v20  ;;  %s495_s7 = scalar_lea.vmem %s381_s6, 16  ;;  %s499_s8 = scalar_lea.vmem %s381_s6, 32 }
  0x2c   :  { %130 = vperm.xlu0 %443, %v40_v5   ;;  %287 = vperm.xlu1 %445, %v42_v19   ;;  %p496_p2 = scmp.ne.s32.totalorder %s381_s6, %s495_s7  ;;  %p500_p3 = scmp.lt.s32.totalorder %s381_s6, %s381_s6 }
  0x2d   :  { %p501_p4 = scmp.lt.s32.totalorder %s499_s8, %s495_s7 }
  0x2f   :  { %p502_p5 = por %p501_p4, %p500_p3 }
  0x30   :  { %444 = vset.pattern.permute.xlu0 %v531_v13 }
  0x31   :  { %209 = vperm.xlu0 %444, %v41_v12   ;;  %p503_p6 = pnand %p502_p5, %p496_p2 }
  0x35   :  { %446 = vset.pattern.permute.xlu0 %v532_v20 }
  0xab   :  { %v131_v14 = vpop.permute.xlu0 %130  ;;  %v288_v26 = vpop.permute.xlu1 %287 }
  0xb0   :  { %v210_v21 = vpop.permute.xlu0 %209 }
  0xfc   :  { %v411_v7 = vpop.f32.mrb[0].mxu0 }
  0xfd   :  { %v127_v8 = vmax.f32 %v411_v7, 0.0  ;;  %v117_v9 = vpop.f32.mrb[1].mxu0 }
  0xfe   :  { %v126_v10 = vmax.f32 %v117_v9, 0.0 }
 0x100   :  { %v430_v11 = vpack.c.bf16 %v127_v8, %v126_v10 }
 0x102   :  { %431 = vmatpush3.bf16.msra.mxu1 %v430_v11 }
 0x103   :  { %424 = vmatprep.subr.mxu1 %v529_v4 }
 0x105   :  { %417 = vmatmul.mubr.msk.f32.vlgmr.msra.gmra.mrb[0].mxu1 %vm133_vm2, %v40_v5 }
 0x106   :  { %426 = vmatprep.mubr.msk.f32.mxu1 %vm528_vm1, %v529_v4 }
 0x1d8   :  { %v202_v15 = vpop.f32.mrb[0].mxu1 }
 0x1d9   :  { %v203_v16 = vadd.f32 %v202_v15, %v131_v14  ;;  %v418_v17 = vpop.f32.mrb[1].mxu1 }
 0x1db   :  { %v206_v18 = vmax.f32 %v203_v16, 0.0 }
 0x1dd   :  { %420 = vmatpush3.msra.mxu0 %v206_v18 }
 0x1de   :  { %422 = vmatmul.mubr.msk.f32.vlgmr.msra.gmra.mrb[2].mxu0 %vm44_vm0, %v41_v12 }
 0x2b1   :  { %v280_v22 = vpop.f32.mrb[2].mxu0 }
 0x2b2   :  { %v281_v23 = vadd.f32 %v280_v22, %v210_v21  ;;  %v423_v24 = vpop.f32.mrb[3].mxu0 }
 0x2b4   :  { %v284_v25 = vmax.f32 %v281_v23, 0.0 }
 0x2b6   :  { %425 = vmatpush3.msk.msra.mxu1 %vm293_vm3, %v284_v25 }
 0x2b7   :  { %427 = vmatmul.mubr.msk.f32.vlgmr.msra.gmra.mrb[2].mxu1 %vm290_vm4, %v42_v19 }
 0x38a   :  { %v363_v27 = vpop.f32.mrb[2].mxu1 }
 0x38b   :  { %v364_v28 = vadd.f32 %v363_v27, %v288_v26  ;;  %v428_v29 = vpop.f32.mrb[3].mxu1 }
 0x38d   :  { %v396_v30 = vmul.f32 -1.442695, %v364_v28 }
 0x38f   :  { %447 = vpow2.f32 %v396_v30 }
 0x399   :  { %v448_v31 = vpop.eup %447 }
 0x39a   :  { %v370_v32 = vadd.f32 1.0, %v448_v31 }
 0x39c   :  { %449 = vrcp.f32 %v370_v32 }
 0x3a6   :  { %v450_v33 = vpop.eup %449 }
 0x3a7   :  { %373 = vst [vmem:[#allocation7] sm:$0x1] %v450_v33 }
 0x3a8   :  { %506 = shalt.err (!%p503_p6)
}
 0x3a9   :  { %s507_s11 = scalar_lea.hbm %s600_s2, 16 }
 0x3aa   :  { %p508_p7 = scmp.ne.s32.totalorder %s600_s2, %s507_s11  ;;  %p511_p8 = scmp.lt.u32.totalorder %s507_s11, %s600_s2 }
 0x3ac   :  { %p513_p9 = pnand %p511_p8, %p508_p7 }
 0x3ae   :  { %516 = shalt.err (!%p513_p9)
}
 0x3af   :  { %383 = dma.vmem_to_hbm [thread:$0]  %s381_s6, 16, %s600_s2, [#allocation4]  }
 0x3b0   :  { %521 = dma.done.wait [#allocation4], 16  }
 0x3b1   :  { %522 = vsyncadd [#allocation4], 4294967280 }
 0x3b2   :  { %387 = vsyncpa [#allocation3], 1 }
 0x3b3   :  { %388 = vsyncpa [#allocation6], 1 }
 0x3b4   :  { %389 = vsyncpa [#allocation4], 1 }

</bundles_post_ra>
